<compile_context>
chip_gen: v7x
topology: tpu7x:2x2x1
jax: 0.10.0
libtpu: 0.0.40
codegen_flags: <defaults>
</compile_context>

<pallas_src>
import functools

import jax
import jax.numpy as jnp
import numpy as np
from jax.experimental import pallas as pl
from jax.experimental.pallas import tpu as pltpu


def _round_up(x, m):
    return ((x + m - 1) // m) * m


# ----------------------------- Pallas kernel -------------------------------

def _attentive_pool_kernel(x_ref, l_ref, w1_ref, b1_ref, w2_ref, o_ref, *, mxu_dtype):
    S, TW, H = x_ref.shape

    # Hoisted weight loads; w1 arrives pre-cast (bf16 by default) -> no per-step cast.
    w1m = w1_ref[...]
    if w1m.dtype != mxu_dtype:
        w1m = w1m.astype(mxu_dtype)
    b1 = b1_ref[...].astype(jnp.float32)              # (1, H)
    w2 = w2_ref[...].astype(jnp.float32)              # (1, H)
    lens_col = l_ref[...]                             # (TW, 1) int32

    x_all = x_ref[...]                                # (S, TW, H), (tw,Hp)-tiled slabs
    xm = x_all.reshape(S * TW, H)                     # contiguous merge (TW % 8 == 0)
    if xm.dtype != mxu_dtype:
        xm = xm.astype(mxu_dtype)

    # One batched MXU matmul for all S subwords + a single EUP tanh launch.
    hs = jnp.tanh(jnp.dot(xm, w1m, preferred_element_type=jnp.float32) + b1)  # (S*TW, H)
    # w2 projection: VPU mul + lane reduce (XLU is a free slot in the MXU-bound regime).
    e = jnp.sum(hs * w2, axis=-1, keepdims=True).reshape(S, TW, 1)            # (S, TW, 1)

    # Rebuild the subword-validity mask in-kernel: subword s valid iff s < len(word).
    sub_idx = jax.lax.broadcasted_iota(jnp.int32, (S, TW, 1), 0)
    e = jnp.where(sub_idx < lens_col[None, :, :], e, -1e20)

    # Column-wise masked softmax over the leading subword axis; everything stays
    # (S, TW, 1) / (TW, 1): no concatenates, no cross-lane relayouts.
    m = jnp.max(e, axis=0, keepdims=True)             # (1, TW, 1)
    p = jnp.exp(e - m)                                # (S, TW, 1); exp(-1e20 - m) == 0
    denom = jnp.sum(p, axis=0)                        # (TW, 1), >= 1 for real words
    inv = pl.reciprocal(denom, approx=True)           # EUP slot (free)

    # Un-normalised weighted sum (VPU FMAs, f32 accumulation), normalised once at the end.
    acc = jnp.sum(p * x_all.astype(jnp.float32), axis=0)   # (TW, H)
    # TODO(synk): optional bf16 output writeback for v5e single-vst-slot relief.
    o_ref[...] = (acc * inv).astype(o_ref.dtype)


# ----------------------- VMEM budgeting / tile choice ------------------------

def _vmem_capacity_bytes():
    try:
        info = pltpu.get_tpu_info()
        cap = int(getattr(info, "vmem_capacity_bytes", 0) or 0)
        if cap > 0:
            return cap
    except Exception:
        pass
    return 64 * 1024 * 1024  # v7x-safe fallback


def _vmem_budget():
    cap = _vmem_capacity_bytes()
    # Leave ~16 MiB headroom for Mosaic internal scratch / spills; never ask for more
    # than 112 MiB even on 128 MiB parts.  v7x (64 MiB) -> 48 MiB, v5e/v6e -> 112 MiB.
    limit = max(32 * 1024 * 1024, min(cap - 16 * 1024 * 1024, 112 * 1024 * 1024))
    tile_budget = (3 * limit) // 4
    return limit, tile_budget


def _choose_word_tile(W, S, Hp, x_itemsize, w_itemsize, tw_req, budget_bytes):
    """Pick the word tile: as large as requested (default 256), clamped by W, shrunk to
    keep the modelled working set under the generation-aware VMEM budget, and never
    shrunk below 128 just to manufacture a second grid tile."""
    tw = max(8, min(_round_up(tw_req, 8), _round_up(W, 8)))

    def working_set(t):
        x_blocks = 2 * S * t * Hp * x_itemsize              # double-buffered activations
        len_blocks = 2 * t * 128 * 4                         # (t,1) i32 lane-pads 1 -> 128
        out_blocks = 2 * t * Hp * 4                          # double-buffered f32 output
        weights = 2 * Hp * Hp * w_itemsize + 2 * 8 * Hp * 4  # conservative: 2 weight bufs
        temps = S * t * Hp * 12 + t * Hp * 4                 # f32 hs + f32/bf16 x copies + acc
        return x_blocks + len_blocks + out_blocks + weights + temps

    while tw > 8 and working_set(tw) > budget_bytes:
        tw = max(8, _round_up(tw // 2, 8))
    # Prefer >=2 grid tiles (megacore), but never drop below a full 128-tall MXU M pass.
    while tw // 2 >= 128 and -(-W // tw) < 2:
        tw = _round_up(tw // 2, 8)
    return tw


# ------------------------------ pallas_call wrapper --------------------------

def attentive_pooling(x, subword_lens, w1, b1, w2, *, tw, mxu_dtype, vmem_limit_bytes):
    """x: (S, Wp, Hp) subword-major vectors, Wp % tw == 0, Hp % 128 == 0.
    subword_lens: (Wp,) int32.  Returns (Wp, Hp) float32 pooled word vectors."""
    S, Wp, Hp = x.shape
    assert Wp % tw == 0 and Hp % 128 == 0
    lens_col = subword_lens.astype(jnp.int32).reshape(Wp, 1)
    kernel = functools.partial(_attentive_pool_kernel, mxu_dtype=mxu_dtype)

    def build(weight_mode):
        wkw = {} if weight_mode is None else {"pipeline_mode": weight_mode}
        return pl.pallas_call(
            kernel,
            out_shape=jax.ShapeDtypeStruct((Wp, Hp), jnp.float32),
            grid_spec=pltpu.PrefetchScalarGridSpec(
                num_scalar_prefetch=0,
                grid=(Wp // tw,),
                in_specs=[
                    pl.BlockSpec((S, tw, Hp), lambda i: (0, i, 0)),      # subword vectors
                    pl.BlockSpec((tw, 1), lambda i: (i, 0)),             # #subwords per word
                    pl.BlockSpec((Hp, Hp), lambda i: (0, 0), **wkw),     # attn linear1 weight
                    pl.BlockSpec((1, Hp), lambda i: (0, 0), **wkw),      # attn linear1 bias
                    pl.BlockSpec((1, Hp), lambda i: (0, 0), **wkw),      # attn linear2 weight
                ],
                out_specs=pl.BlockSpec((tw, Hp), lambda i: (i, 0)),      # lane-dense output
            ),
            # NOTE: on v7x megacore sharding of the word-tile axis relies on "parallel";
            # if profiling shows one idle TC, switch to an explicit core-sized grid axis.
            compiler_params=pltpu.CompilerParams(
                dimension_semantics=("parallel",),
                vmem_limit_bytes=int(vmem_limit_bytes)),
        )

    buffered = getattr(pl, "Buffered", None)
    modes = ([buffered(1)] if buffered is not None else []) + [None]
    last_err = None
    for mode in modes:  # single-buffer the constant weight blocks; fall back if rejected
        try:
            return build(mode)(x, lens_col, w1, b1, w2)
        except Exception as e:  # pragma: no cover - lowering fallback
            last_err = e
    raise last_err


# ------------------------------ JAX glue ------------------------------------

def lens2mask(lens, max_len):
    return jnp.arange(max_len)[None, :] < lens[:, None]


def _rank_scatter_gather(dst_mask_flat, src_flat, src_mask_flat):
    """masked_select(src, src_mask) followed by masked_scatter_(dst_mask): the k-th
    selected source row (row-major) lands at the k-th True destination position
    (row-major); all other destination rows are zero."""
    n_src, h = src_flat.shape
    src_rank = jnp.cumsum(src_mask_flat.astype(jnp.int32)) - 1
    scatter_idx = jnp.where(src_mask_flat, src_rank, n_src)      # OOB -> dropped
    buf = jnp.zeros((n_src, h), src_flat.dtype)
    buf = buf.at[scatter_idx].set(src_flat, mode="drop")
    dst_rank = jnp.cumsum(dst_mask_flat.astype(jnp.int32)) - 1
    gathered = buf[jnp.clip(dst_rank, 0, n_src - 1)]
    return jnp.where(dst_mask_flat[:, None], gathered, jnp.zeros_like(gathered))


def _build_subword_major(inputs_flat, select_mask_flat, subword_mask_ws):
    """masked_select + masked_scatter_ directly into the SUBWORD-MAJOR (S, Wp, H)
    tensor (only the small (Wp,S) index/mask arrays are transposed, not the data)."""
    n_src, h = inputs_flat.shape
    src_rank = jnp.cumsum(select_mask_flat.astype(jnp.int32)) - 1
    scatter_idx = jnp.where(select_mask_flat, src_rank, n_src)   # OOB -> dropped
    buf = jnp.zeros((n_src, h), inputs_flat.dtype)
    buf = buf.at[scatter_idx].set(inputs_flat, mode="drop")
    # destination rank in the original (word-major, row-major over (W,S)) order
    dst_rank = (jnp.cumsum(subword_mask_ws.reshape(-1).astype(jnp.int32)) - 1
                ).reshape(subword_mask_ws.shape)                 # (Wp, S)
    dst_rank_t = dst_rank.T                                      # (S, Wp)
    mask_t = subword_mask_ws.T                                   # (S, Wp)
    gathered = buf[jnp.clip(dst_rank_t, 0, n_src - 1)]           # (S, Wp, H)
    return jnp.where(mask_t[:, :, None], gathered, jnp.zeros_like(gathered))


def subword_aggregation_forward(inputs, subword_select_mask, subword_lens, lens,
                                params, s_max, l_max, *, tw=256,
                                mxu_dtype=jnp.bfloat16, x_store_dtype=None):
    B, T, H = inputs.shape
    W = subword_lens.shape[0]
    w1, b1, w2, b2 = params
    del b2  # softmax is shift-invariant: the final Linear's bias cannot affect the output

    Hp = _round_up(max(H, 128), 128)
    # x stays f32 by default so the weighted-sum accumulation matches the f32 reference;
    # pass x_store_dtype=jnp.bfloat16 to also halve the dominant HBM stream.
    x_store_dtype = x_store_dtype or inputs.dtype
    x_itemsize = jnp.dtype(x_store_dtype).itemsize
    w_itemsize = jnp.dtype(mxu_dtype).itemsize
    vmem_limit, tile_budget = _vmem_budget()
    tw_eff = _choose_word_tile(W, s_max, Hp, x_itemsize, w_itemsize, tw, tile_budget)
    Wp = _round_up(W, tw_eff)

    # masked_select + masked_scatter_ directly into the subword-major tensor at the
    # padded word count (no extra full-array pad of activations, no data transpose).
    sub_lens_p = jnp.pad(subword_lens.astype(jnp.int32), (0, Wp - W))
    subword_mask_p = lens2mask(sub_lens_p, s_max)                 # (Wp, s_max)
    reshaped = _build_subword_major(
        inputs.reshape(-1, H), subword_select_mask.reshape(-1), subword_mask_p)  # (S, Wp, H)

    # Lane-dense hidden: pad H to a multiple of 128 (no-op at real model sizes).
    if Hp != H:
        reshaped = jnp.pad(reshaped, ((0, 0), (0, 0), (0, Hp - H)))
        w1 = jnp.pad(w1, ((0, Hp - H), (0, Hp - H)))
        b1 = jnp.pad(b1, ((0, 0), (0, Hp - H)))
        w2 = jnp.pad(w2, ((0, 0), (0, Hp - H)))

    # Host-side dtype prep: bf16 MXU operand for w1 (halves its DMA + VMEM and removes
    # the per-grid-step in-kernel cast); optional bf16 activation storage.
    w1 = w1.astype(mxu_dtype)
    reshaped = reshaped.astype(x_store_dtype)

    pooled = attentive_pooling(reshaped, sub_lens_p, w1, b1, w2,
                               tw=tw_eff, mxu_dtype=mxu_dtype,
                               vmem_limit_bytes=vmem_limit)[:W, :H]

    # masked_scatter_ word vectors into (B, l_max, H)
    word_mask = lens2mask(lens, l_max)                            # (B, l_max)
    outputs = _rank_scatter_gather(
        word_mask.reshape(-1), pooled, jnp.ones((W,), bool)).reshape(B, l_max, H)
    return outputs


# ------------------------- pure-JAX reference -------------------------------

def ref_attentive_pooling(x, mask, w1, b1, w2, b2):
    h = jnp.tanh(jnp.einsum('wsh,hk->wsk', x, w1) + b1)
    e = jnp.einsum('wsk,k->ws', h, w2[0]) + b2[0, 0]
    e = e + (1.0 - mask.astype(jnp.float32)) * (-1e20)
    a = jax.nn.softmax(e, axis=1)
    return jnp.einsum('ws,wsh->wh', a, x)


# --------------------------------- main --------------------------------------

if __name__ == "__main__":
    key = jax.random.PRNGKey(0)
    B, T, H = 2, 16, 32

    lens_np = np.array([5, 3], dtype=np.int32)                                # words/sentence
    subword_lens_np = np.array([2, 1, 3, 1, 2, 1, 2, 1], dtype=np.int32)      # subwords/word
    L_max = int(lens_np.max())
    S_max = int(subword_lens_np.max())
    W = subword_lens_np.shape[0]
    assert int(lens_np.sum()) == W

    # selected wordpiece positions per sentence; per-row counts match subword_lens sums
    sel_np = np.zeros((B, T), dtype=bool)
    sel_np[0, 1:10] = True     # 9 = 2+1+3+1+2
    sel_np[1, 1:5] = True      # 4 = 1+2+1

    k_in, k_w1, k_b1, k_w2, k_b2 = jax.random.split(key, 5)
    inputs = jax.random.normal(k_in, (B, T, H), jnp.float32)
    w1 = jax.random.normal(k_w1, (H, H), jnp.float32) * 0.1   # Linear(H,H), pre-transposed
    b1 = jax.random.normal(k_b1, (1, H), jnp.float32) * 0.1
    w2 = jax.random.normal(k_w2, (1, H), jnp.float32) * 0.1   # Linear(H,1), pre-transposed
    b2 = jax.random.normal(k_b2, (1, 1), jnp.float32) * 0.1
    params = (w1, b1, w2, b2)

    subword_select_mask = jnp.asarray(sel_np)
    subword_lens = jnp.asarray(subword_lens_np)
    lens = jnp.asarray(lens_np)

    # default path: bf16 MXU operands, f32 activations / accumulation
    out = subword_aggregation_forward(inputs, subword_select_mask, subword_lens,
                                      lens, params, S_max, L_max)
    out = jax.block_until_ready(out)
    assert out.shape == (B, L_max, H)

    # exactness path: f32 MXU operands
    out_f32 = subword_aggregation_forward(inputs, subword_select_mask, subword_lens,
                                          lens, params, S_max, L_max,
                                          mxu_dtype=jnp.float32)
    out_f32 = jax.block_until_ready(out_f32)

    # pure-JAX reference (keeps b2; kernel drops it -- identical by softmax shift-invariance)
    subword_mask = lens2mask(subword_lens, S_max)
    reshaped_ref = _rank_scatter_gather(subword_mask.reshape(-1),
                                        inputs.reshape(-1, H),
                                        subword_select_mask.reshape(-1)).reshape(W, S_max, H)
    pooled_ref = ref_attentive_pooling(reshaped_ref, subword_mask, w1, b1, w2, b2)
    word_mask = lens2mask(lens, L_max)
    out_ref = _rank_scatter_gather(word_mask.reshape(-1), pooled_ref,
                                   jnp.ones((W,), bool)).reshape(B, L_max, H)

    np.testing.assert_allclose(np.asarray(out_f32), np.asarray(out_ref),
                               rtol=2e-3, atol=2e-3)
    np.testing.assert_allclose(np.asarray(out), np.asarray(out_ref),
                               rtol=2e-2, atol=2e-2)

    print("KERNEL_OK")
</pallas_src>

<mosaic_0001>
module attributes {stable_mosaic.version = 11 : i64} {
  func.func @_attentive_pool_kernel(%arg0: i32, %arg1: memref<3x8x128xf32, #tpu.memory_space<vmem>>, %arg2: memref<8x1xi32, #tpu.memory_space<vmem>>, %arg3: memref<128x128xbf16, #tpu.memory_space<vmem>>, %arg4: memref<1x128xf32, #tpu.memory_space<vmem>>, %arg5: memref<1x128xf32, #tpu.memory_space<vmem>>, %arg6: memref<8x128xf32, #tpu.memory_space<vmem>>) attributes {dimension_semantics = [#tpu.dimension_semantics<parallel>], iteration_bounds = array<i64: 1>, scalar_prefetch = 0 : i64, scratch_operands = 0 : i64, tpu.core_type = #tpu.core_type<tc>, window_params = [{transform_indices = @transform_0, window_bounds = array<i64: 3, 8, 128>}, {transform_indices = @transform_1, window_bounds = array<i64: 8, 1>}, {pipeline_mode = #tpu.pipeline_mode<synchronous>, transform_indices = @transform_2, window_bounds = array<i64: 128, 128>}, {pipeline_mode = #tpu.pipeline_mode<synchronous>, transform_indices = @transform_3, window_bounds = array<i64: 1, 128>}, {pipeline_mode = #tpu.pipeline_mode<synchronous>, transform_indices = @transform_4, window_bounds = array<i64: 1, 128>}, {transform_indices = @transform_5, window_bounds = array<i64: 8, 128>}]} {
    %c0 = arith.constant 0 : index
    %c0_0 = arith.constant 0 : index
    %0 = vector.load %arg3[%c0, %c0_0] : memref<128x128xbf16, #tpu.memory_space<vmem>>, vector<128x128xbf16>
    %c0_1 = arith.constant 0 : index
    %c0_2 = arith.constant 0 : index
    %1 = vector.load %arg4[%c0_1, %c0_2] : memref<1x128xf32, #tpu.memory_space<vmem>>, vector<1x128xf32>
    %c0_3 = arith.constant 0 : index
    %c0_4 = arith.constant 0 : index
    %2 = vector.load %arg5[%c0_3, %c0_4] : memref<1x128xf32, #tpu.memory_space<vmem>>, vector<1x128xf32>
    %c0_5 = arith.constant 0 : index
    %c0_6 = arith.constant 0 : index
    %3 = vector.load %arg2[%c0_5, %c0_6] : memref<8x1xi32, #tpu.memory_space<vmem>>, vector<8x1xi32>
    %c0_7 = arith.constant 0 : index
    %c0_8 = arith.constant 0 : index
    %c0_9 = arith.constant 0 : index
    %4 = vector.load %arg1[%c0_7, %c0_8, %c0_9] : memref<3x8x128xf32, #tpu.memory_space<vmem>>, vector<3x8x128xf32>
    %5 = vector.shape_cast %4 : vector<3x8x128xf32> to vector<24x128xf32>
    %6 = arith.truncf %5 : vector<24x128xf32> to vector<24x128xbf16>
    %cst = arith.constant dense<0.000000e+00> : vector<24x128xf32>
    %7 = tpu.matmul %6, %0, %cst {dimension_numbers = #tpu.dot_dimension_numbers<[1], [0], [0], [1], [0, 0, 1, 1], [], []>} : vector<24x128xbf16>, vector<128x128xbf16>, vector<24x128xf32> -> vector<24x128xf32>
    %8 = vector.broadcast %1 : vector<1x128xf32> to vector<24x128xf32>
    %9 = arith.addf %7, %8 : vector<24x128xf32>
    %10 = math.tanh %9 : vector<24x128xf32>
    %11 = vector.broadcast %2 : vector<1x128xf32> to vector<24x128xf32>
    %12 = arith.mulf %10, %11 : vector<24x128xf32>
    %cst_10 = arith.constant dense<0.000000e+00> : vector<24xf32>
    %13 = vector.multi_reduction <add>, %12, %cst_10 [1] : vector<24x128xf32> to vector<24xf32>
    %14 = vector.shape_cast %13 : vector<24xf32> to vector<24x1xf32>
    %15 = vector.shape_cast %14 : vector<24x1xf32> to vector<3x8x1xf32>
    %16 = tpu.iota {dimensions = array<i32: 0>} : vector<3x8x1xi32>
    %17 = vector.shape_cast %3 : vector<8x1xi32> to vector<1x8x1xi32>
    %18 = vector.broadcast %17 : vector<1x8x1xi32> to vector<3x8x1xi32>
    %19 = arith.cmpi slt, %16, %18 : vector<3x8x1xi32>
    %cst_11 = arith.constant -1.000000e+20 : f32
    %20 = vector.broadcast %cst_11 : f32 to vector<3x8x1xf32>
    %21 = arith.select %19, %15, %20 : vector<3x8x1xi1>, vector<3x8x1xf32>
    %cst_12 = arith.constant dense<0xFF800000> : vector<8x1xf32>
    %22 = vector.multi_reduction <maximumf>, %21, %cst_12 [0] : vector<3x8x1xf32> to vector<8x1xf32>
    %23 = vector.shape_cast %22 : vector<8x1xf32> to vector<1x8x1xf32>
    %24 = vector.broadcast %23 : vector<1x8x1xf32> to vector<3x8x1xf32>
    %25 = arith.subf %21, %24 : vector<3x8x1xf32>
    %26 = math.exp %25 : vector<3x8x1xf32>
    %cst_13 = arith.constant dense<0.000000e+00> : vector<8x1xf32>
    %27 = vector.multi_reduction <add>, %26, %cst_13 [0] : vector<3x8x1xf32> to vector<8x1xf32>
    %28 = tpu.reciprocal %27 {approx = true} : vector<8x1xf32> -> vector<8x1xf32>
    %29 = vector.broadcast %26 : vector<3x8x1xf32> to vector<3x8x128xf32>
    %30 = arith.mulf %29, %4 : vector<3x8x128xf32>
    %cst_14 = arith.constant dense<0.000000e+00> : vector<8x128xf32>
    %31 = vector.multi_reduction <add>, %30, %cst_14 [0] : vector<3x8x128xf32> to vector<8x128xf32>
    %32 = vector.broadcast %28 : vector<8x1xf32> to vector<8x128xf32>
    %33 = arith.mulf %31, %32 : vector<8x128xf32>
    %c0_15 = arith.constant 0 : index
    %c0_16 = arith.constant 0 : index
    %34 = vector.load %arg6[%c0_15, %c0_16] : memref<8x128xf32, #tpu.memory_space<vmem>>, vector<8x128xf32>
    tpu.vector_store %arg6[%c0_15, %c0_16], %33 {strides = array<i32>} : memref<8x128xf32, #tpu.memory_space<vmem>>, vector<8x128xf32>,
    return
  }
  func.func @transform_0(%arg0: i32) -> (i32, i32, i32) {
    %c0_i32 = arith.constant 0 : i32
    %c0_i32_0 = arith.constant 0 : i32
    %c0_i32_1 = arith.constant 0 : i32
    return %c0_i32, %arg0, %c0_i32_0 : i32, i32, i32
  }
  func.func @transform_1(%arg0: i32) -> (i32, i32) {
    %c0_i32 = arith.constant 0 : i32
    %c0_i32_0 = arith.constant 0 : i32
    return %arg0, %c0_i32 : i32, i32
  }
  func.func @transform_2(%arg0: i32) -> (i32, i32) {
    %c0_i32 = arith.constant 0 : i32
    %c0_i32_0 = arith.constant 0 : i32
    %c0_i32_1 = arith.constant 0 : i32
    return %c0_i32, %c0_i32_0 : i32, i32
  }
  func.func @transform_3(%arg0: i32) -> (i32, i32) {
    %c0_i32 = arith.constant 0 : i32
    %c0_i32_0 = arith.constant 0 : i32
    %c0_i32_1 = arith.constant 0 : i32
    return %c0_i32, %c0_i32_0 : i32, i32
  }
  func.func @transform_4(%arg0: i32) -> (i32, i32) {
    %c0_i32 = arith.constant 0 : i32
    %c0_i32_0 = arith.constant 0 : i32
    %c0_i32_1 = arith.constant 0 : i32
    return %c0_i32, %c0_i32_0 : i32, i32
  }
  func.func @transform_5(%arg0: i32) -> (i32, i32) {
    %c0_i32 = arith.constant 0 : i32
    %c0_i32_0 = arith.constant 0 : i32
    return %arg0, %c0_i32 : i32, i32
  }
}

module attributes {stable_mosaic.version = 11 : i64} {
  func.func @_attentive_pool_kernel(%arg0: i32, %arg1: memref<3x8x128xf32, #tpu.memory_space<vmem>>, %arg2: memref<8x1xi32, #tpu.memory_space<vmem>>, %arg3: memref<128x128xbf16, #tpu.memory_space<vmem>>, %arg4: memref<1x128xf32, #tpu.memory_space<vmem>>, %arg5: memref<1x128xf32, #tpu.memory_space<vmem>>, %arg6: memref<8x128xf32, #tpu.memory_space<vmem>>) attributes {dimension_semantics = [#tpu.dimension_semantics<parallel>], iteration_bounds = array<i64: 1>, scalar_prefetch = 0 : i64, scratch_operands = 0 : i64, tpu.core_type = #tpu.core_type<tc>, window_params = [{transform_indices = @transform_0, window_bounds = array<i64: 3, 8, 128>}, {transform_indices = @transform_1, window_bounds = array<i64: 8, 1>}, {pipeline_mode = #tpu.pipeline_mode<synchronous>, transform_indices = @transform_2, window_bounds = array<i64: 128, 128>}, {pipeline_mode = #tpu.pipeline_mode<synchronous>, transform_indices = @transform_3, window_bounds = array<i64: 1, 128>}, {pipeline_mode = #tpu.pipeline_mode<synchronous>, transform_indices = @transform_4, window_bounds = array<i64: 1, 128>}, {transform_indices = @transform_5, window_bounds = array<i64: 8, 128>}]} {
    %c0 = arith.constant 0 : index
    %c0_0 = arith.constant 0 : index
    %0 = vector.load %arg3[%c0, %c0_0] : memref<128x128xbf16, #tpu.memory_space<vmem>>, vector<128x128xbf16>
    %c0_1 = arith.constant 0 : index
    %c0_2 = arith.constant 0 : index
    %1 = vector.load %arg4[%c0_1, %c0_2] : memref<1x128xf32, #tpu.memory_space<vmem>>, vector<1x128xf32>
    %c0_3 = arith.constant 0 : index
    %c0_4 = arith.constant 0 : index
    %2 = vector.load %arg5[%c0_3, %c0_4] : memref<1x128xf32, #tpu.memory_space<vmem>>, vector<1x128xf32>
    %c0_5 = arith.constant 0 : index
    %c0_6 = arith.constant 0 : index
    %3 = vector.load %arg2[%c0_5, %c0_6] : memref<8x1xi32, #tpu.memory_space<vmem>>, vector<8x1xi32>
    %c0_7 = arith.constant 0 : index
    %c0_8 = arith.constant 0 : index
    %c0_9 = arith.constant 0 : index
    %4 = vector.load %arg1[%c0_7, %c0_8, %c0_9] : memref<3x8x128xf32, #tpu.memory_space<vmem>>, vector<3x8x128xf32>
    %5 = vector.shape_cast %4 : vector<3x8x128xf32> to vector<24x128xf32>
    %6 = arith.truncf %5 : vector<24x128xf32> to vector<24x128xbf16>
    %cst = arith.constant dense<0.000000e+00> : vector<24x128xf32>
    %7 = tpu.matmul %6, %0, %cst {dimension_numbers = #tpu.dot_dimension_numbers<[1], [0], [0], [1], [0, 0, 1, 1], [], []>} : vector<24x128xbf16>, vector<128x128xbf16>, vector<24x128xf32> -> vector<24x128xf32>
    %8 = vector.broadcast %1 : vector<1x128xf32> to vector<24x128xf32>
    %9 = arith.addf %7, %8 : vector<24x128xf32>
    %10 = math.tanh %9 : vector<24x128xf32>
    %11 = vector.broadcast %2 : vector<1x128xf32> to vector<24x128xf32>
    %12 = arith.mulf %10, %11 : vector<24x128xf32>
    %cst_10 = arith.constant dense<0.000000e+00> : vector<24xf32>
    %13 = vector.multi_reduction <add>, %12, %cst_10 [1] : vector<24x128xf32> to vector<24xf32>
    %14 = vector.shape_cast %13 : vector<24xf32> to vector<24x1xf32>
    %15 = vector.shape_cast %14 : vector<24x1xf32> to vector<3x8x1xf32>
    %16 = tpu.iota {dimensions = array<i32: 0>} : vector<3x8x1xi32>
    %17 = vector.shape_cast %3 : vector<8x1xi32> to vector<1x8x1xi32>
    %18 = vector.broadcast %17 : vector<1x8x1xi32> to vector<3x8x1xi32>
    %19 = arith.cmpi slt, %16, %18 : vector<3x8x1xi32>
    %cst_11 = arith.constant -1.000000e+20 : f32
    %20 = vector.broadcast %cst_11 : f32 to vector<3x8x1xf32>
    %21 = arith.select %19, %15, %20 : vector<3x8x1xi1>, vector<3x8x1xf32>
    %cst_12 = arith.constant dense<0xFF800000> : vector<8x1xf32>
    %22 = vector.multi_reduction <maximumf>, %21, %cst_12 [0] : vector<3x8x1xf32> to vector<8x1xf32>
    %23 = vector.shape_cast %22 : vector<8x1xf32> to vector<1x8x1xf32>
    %24 = vector.broadcast %23 : vector<1x8x1xf32> to vector<3x8x1xf32>
    %25 = arith.subf %21, %24 : vector<3x8x1xf32>
    %26 = math.exp %25 : vector<3x8x1xf32>
    %cst_13 = arith.constant dense<0.000000e+00> : vector<8x1xf32>
    %27 = vector.multi_reduction <add>, %26, %cst_13 [0] : vector<3x8x1xf32> to vector<8x1xf32>
    %28 = tpu.reciprocal %27 {approx = true} : vector<8x1xf32> -> vector<8x1xf32>
    %29 = vector.broadcast %26 : vector<3x8x1xf32> to vector<3x8x128xf32>
    %30 = arith.mulf %29, %4 : vector<3x8x128xf32>
    %cst_14 = arith.constant dense<0.000000e+00> : vector<8x128xf32>
    %31 = vector.multi_reduction <add>, %30, %cst_14 [0] : vector<3x8x128xf32> to vector<8x128xf32>
    %32 = vector.broadcast %28 : vector<8x1xf32> to vector<8x128xf32>
    %33 = arith.mulf %31, %32 : vector<8x128xf32>
    %c0_15 = arith.constant 0 : index
    %c0_16 = arith.constant 0 : index
    %34 = vector.load %arg6[%c0_15, %c0_16] : memref<8x128xf32, #tpu.memory_space<vmem>>, vector<8x128xf32>
    tpu.vector_store %arg6[%c0_15, %c0_16], %33 {strides = array<i32>} : memref<8x128xf32, #tpu.memory_space<vmem>>, vector<8x128xf32>,
    return
  }
  func.func @transform_0(%arg0: i32) -> (i32, i32, i32) {
    %c0_i32 = arith.constant 0 : i32
    %c0_i32_0 = arith.constant 0 : i32
    %c0_i32_1 = arith.constant 0 : i32
    return %c0_i32, %arg0, %c0_i32_0 : i32, i32, i32
  }
  func.func @transform_1(%arg0: i32) -> (i32, i32) {
    %c0_i32 = arith.constant 0 : i32
    %c0_i32_0 = arith.constant 0 : i32
    return %arg0, %c0_i32 : i32, i32
  }
  func.func @transform_2(%arg0: i32) -> (i32, i32) {
    %c0_i32 = arith.constant 0 : i32
    %c0_i32_0 = arith.constant 0 : i32
    %c0_i32_1 = arith.constant 0 : i32
    return %c0_i32, %c0_i32_0 : i32, i32
  }
  func.func @transform_3(%arg0: i32) -> (i32, i32) {
    %c0_i32 = arith.constant 0 : i32
    %c0_i32_0 = arith.constant 0 : i32
    %c0_i32_1 = arith.constant 0 : i32
    return %c0_i32, %c0_i32_0 : i32, i32
  }
  func.func @transform_4(%arg0: i32) -> (i32, i32) {
    %c0_i32 = arith.constant 0 : i32
    %c0_i32_0 = arith.constant 0 : i32
    %c0_i32_1 = arith.constant 0 : i32
    return %c0_i32, %c0_i32_0 : i32, i32
  }
  func.func @transform_5(%arg0: i32) -> (i32, i32) {
    %c0_i32 = arith.constant 0 : i32
    %c0_i32_0 = arith.constant 0 : i32
    return %arg0, %c0_i32 : i32, i32
  }
}

</mosaic_0001>

<bundles_post_ra>
// kernel: tpu_custom_call.1
= control target key start
LH: loop header
LB: loop body
LE: loop exit
PB: predicated region body
PF: predicated region fallthrough
CT: control target
= control target key end

     0   :  { %10 = vsyncpa [#allocation3], 0  ;;  %s510_s0 = inlined_call_operand.hbm [shape: f32[3,8,128], index: 0, kind: input, shape index: {}]   ;;  %s511_s1 = inlined_call_operand.vmem [shape: s32[8,1], index: 1, kind: input, shape index: {}]   ;;  %s512_s2 = inlined_call_operand.hbm [shape: bf16[128,128], index: 2, kind: input, shape index: {}]   ;;  %s513_s3 = inlined_call_operand.vmem [shape: f32[1,128], index: 3, kind: input, shape index: {}]   ;;  %s514_s4 = inlined_call_operand.vmem [shape: f32[1,128], index: 4, kind: input, shape index: {}]   ;;  %s515_s5 = inlined_call_operand.hbm [shape: f32[8,128], index: 5, kind: output, shape index: {}]  }
   0x1   :  { %11 = vsyncpa [#allocation6], 0 }
   0x2   :  { %12 = vsyncpa [#allocation4], 0  ;;  %s408_s18 = smov [#allocation2]   ;;  %s336_s22 = scalar_lea.hbm %s510_s0, 384 }
   0x3   :  { %s18_s19 = sshll.u32 %s408_s18, 4  ;;  %p337_p0 = scmp.ne.s32.totalorder %s510_s0, %s336_s22  ;;  %s19_s19 = int_to_ptr.vmem [resolvable:$true] %s18_s19 }
   0x4   :  { %p340_p1 = scmp.lt.u32.totalorder %s336_s22, %s510_s0 }
   0x6   :  { %p342_p2 = pnand %p340_p1, %p337_p0 }
   0x8   :  { %345 = shalt.err (!%p342_p2)
}
   0x9   :  { %s346_s27 = scalar_lea.vmem %s19_s19, 384  ;;  %p351_p4 = scmp.lt.s32.totalorder %s19_s19, %s19_s19 }
   0xa   :  { %p347_p3 = scmp.ne.s32.totalorder %s19_s19, %s346_s27  ;;  %p352_p5 = scmp.lt.s32.totalorder %s346_s27, %s346_s27 }
   0xc   :  { %p353_p6 = por %p352_p5, %p351_p4 }
   0xe   :  { %p354_p7 = pnand %p353_p6, %p347_p3 }
  0x10   :  { %357 = shalt.err (!%p354_p7)
}
  0x11   :  { %s409_s28 = smov 128   ;;  %s410_s29 = smov 8  }
  0x12   :  { %24 = dma.hbm_to_vmem [thread:$0]  %s510_s0, 384, %s19_s19, [#allocation3], %s409_s28, %s409_s28, %s410_s29  }
  0x13   :  { %s411_s7 = smov [#allocation5]   ;;  %s358_s11 = scalar_lea.hbm %s512_s2, 1024 }
  0x14   :  { %s32_s8 = sshll.u32 %s411_s7, 4  ;;  %p359_p8 = scmp.ne.s32.totalorder %s512_s2, %s358_s11  ;;  %s33_s8 = int_to_ptr.vmem [resolvable:$true] %s32_s8 }
  0x15   :  { %p362_p9 = scmp.lt.u32.totalorder %s358_s11, %s512_s2 }
  0x17   :  { %p364_p10 = pnand %p362_p9, %p359_p8 }
  0x19   :  { %367 = shalt.err (!%p364_p10)
}
  0x1a   :  { %s368_s16 = scalar_lea.vmem %s33_s8, 1024  ;;  %p373_p12 = scmp.lt.s32.totalorder %s33_s8, %s33_s8 }
  0x1b   :  { %p369_p11 = scmp.ne.s32.totalorder %s33_s8, %s368_s16  ;;  %p374_p13 = scmp.lt.s32.totalorder %s368_s16, %s368_s16 }
  0x1d   :  { %p375_p0 = por %p374_p13, %p373_p12 }
  0x1f   :  { %p376_p1 = pnand %p375_p0, %p369_p11 }
  0x21   :  { %379 = shalt.err (!%p376_p1)
}
  0x22   :  { %s412_s0 = smov 64   ;;  %s413_s17 = smov 4  }
  0x23   :  { %38 = dma.hbm_to_vmem [thread:$0]  %s512_s2, 1024, %s33_s8, [#allocation6], %s412_s0, %s412_s0, %s413_s17  }
  0x24   :  { %402 = dma.done.wait [#allocation3], 384  }
  0x25   :  { %403 = vsyncadd [#allocation3], 4294966912 }
  0x26   :  { %404 = dma.done.wait [#allocation6], 1024  }
  0x27   :  { %405 = vsyncadd [#allocation6], 4294966272  ;;  %v314_v0 = vld [vmem:[#allocation5] sm:$0xff]   ;;  %v315_v1 = vld [vmem:[#allocation5 + $0x8] sm:$0xff]   ;;  %v414_v28 = vmov 0   ;;  %vm200_vm3 = vcmask 7168  }
  0x28   :  { %284 = vmatprep.subr.bf16.mxu0 %v314_v0  ;;  %v316_v2 = vld [vmem:[#allocation5 + $0x10] sm:$0xff]   ;;  %v317_v3 = vld [vmem:[#allocation5 + $0x18] sm:$0xff]   ;;  %v470_v4 = vld [vmem:[#allocation2] sm:$0xff]  ;;  %313 = vset.pattern.permute.xlu0 %v414_v28 }
  0x29   :  { %285 = vmatpush3.bf16.msra.mxu0 %v314_v0  ;;  %v472_v5 = vld [vmem:[#allocation2 + $0x8] sm:$0xff]  ;;  %v318_v7 = vld [vmem:[#allocation5 + $0x20] sm:$0xff]   ;;  %v319_v8 = vld [vmem:[#allocation5 + $0x28] sm:$0xff]   ;;  %312 = vset.pattern.permute.xlu1 %v414_v28 }
  0x2a   :  { %286 = vmatprep.subr.bf16.mxu0 %v315_v1  ;;  %v72_v6 = vpack.c.bf16 %v472_v5, %v470_v4  ;;  %v320_v9 = vld [vmem:[#allocation5 + $0x30] sm:$0xff]   ;;  %v321_v10 = vld [vmem:[#allocation5 + $0x38] sm:$0xff]   ;;  %v264_v13 = vld [vmem:[%s513_s3] ss:$0 sm:$0xff] }
  0x2b   :  { %v476_v11 = vld [vmem:[#allocation2 + $0x10] sm:$0xff]  ;;  %v273_v21 = vld [vmem:[%s514_s4] ss:$0 sm:$0xff] }
  0x2c   :  { %300 = vmatprep.mubr.bf16.mxu0 %v72_v6  ;;  %v73_v12 = vpack.c.bf16 %v476_v11, %v476_v11  ;;  %v68_v29 = vld [vmem:[%s511_s1] sm:$0xff]  ;;  %s415_s1 = smov [#allocation7]  }
  0x2d   :  { %287 = vmatpush3.bf16.msra.mxu0 %v315_v1  ;;  %vm194_vm0 = vcmp.gt.s32.totalorder %v68_v29, 0  ;;  %vm196_vm1 = vcmp.gt.s32.totalorder %v68_v29, 2  ;;  %vm195_vm2 = vcmp.gt.s32.totalorder %v68_v29, 1  ;;  %s254_s4 = sshll.u32 %s415_s1, 4  ;;  %s255_s4 = int_to_ptr.vmem [resolvable:$true] %s254_s4 }
  0x2e   :  { %288 = vmatprep.subr.bf16.mxu0 %v316_v2  ;;  %s380_s24 = scalar_lea.vmem %s255_s4, 128  ;;  %p385_p3 = scmp.lt.s32.totalorder %s255_s4, %s255_s4 }
  0x2f   :  { %p381_p2 = scmp.ne.s32.totalorder %s255_s4, %s380_s24  ;;  %p386_p4 = scmp.lt.s32.totalorder %s380_s24, %s380_s24 }
  0x31   :  { %289 = vmatpush3.bf16.msra.mxu0 %v316_v2  ;;  %p387_p5 = por %p386_p4, %p385_p3 }
  0x32   :  { %290 = vmatprep.subr.bf16.mxu0 %v317_v3 }
  0x33   :  { %p388_p6 = pnand %p387_p5, %p381_p2 }
  0x35   :  { %291 = vmatpush3.bf16.msra.mxu0 %v317_v3 }
  0x36   :  { %292 = vmatprep.subr.bf16.mxu0 %v318_v7 }
  0x39   :  { %293 = vmatpush3.bf16.msra.mxu0 %v318_v7 }
  0x3a   :  { %294 = vmatprep.subr.bf16.mxu0 %v319_v8 }
  0x3d   :  { %295 = vmatpush3.bf16.msra.mxu0 %v319_v8 }
  0x3e   :  { %296 = vmatprep.subr.bf16.mxu0 %v320_v9 }
  0x41   :  { %297 = vmatpush3.bf16.msra.mxu0 %v320_v9 }
  0x42   :  { %298 = vmatprep.subr.bf16.mxu0 %v321_v10 }
  0x45   :  { %299 = vmatpush3.bf16.msra.mxu0 %v321_v10 }
  0x48   :  { %301 = vmatmul.mubr.bf16.vlgmr.msra.gmra.mrb[0].mxu0 %v73_v12 }
 0x11b   :  { %v302_v14 = vpop.f32.mrb[0].mxu0 }
 0x11c   :  { %v171_v15 = vadd.f32 %v302_v14, %v264_v13  ;;  %v162_v16 = vpop.f32.mrb[1].mxu0 }
 0x11d   :  { %v163_v17 = vadd.f32 %v264_v13, %v162_v16  ;;  %v303_v18 = vpop.f32.mrb[2].mxu0 }
 0x11e   :  { %322 = vtanh.f32 %v171_v15  ;;  %v165_v19 = vpop.f32.mrb[3].mxu0 }
 0x11f   :  { %324 = vtanh.f32 %v163_v17  ;;  %v166_v20 = vadd.f32 %v264_v13, %v165_v19 }
 0x121   :  { %326 = vtanh.f32 %v166_v20 }
 0x128   :  { %v323_v22 = vpop.eup %322 }
 0x129   :  { %v325_v23 = vpop.eup %324  ;;  %v187_v24 = vmul.f32 %v323_v22, %v273_v21 }
 0x12a   :  { %v185_v25 = vmul.f32 %v325_v23, %v273_v21 }
 0x12b   :  { %v327_v26 = vpop.eup %326  ;;  %192 = vadd.xlane.f32.xlu1 %v187_v24 }
 0x12c   :  { %188 = vadd.xlane.f32.xlu0 %v185_v25  ;;  %v186_v27 = vmul.f32 %v327_v26, %v273_v21 }
 0x130   :  { %190 = vadd.xlane.f32.xlu0 %v186_v27 }
 0x1b8   :  { %v193_v31 = vpop.xlane.xlu1 %192 }
 0x1b9   :  { %v189_v30 = vpop.xlane.xlu0 %188  ;;  %v199_v34 = vsel %vm196_vm1, %v193_v31, -1e+20 }
 0x1ba   :  { %v197_v32 = vsel %vm194_vm0, %v189_v30, -1e+20  ;;  %v203_v39 = vsel %vm200_vm3, %v199_v34, -inf }
 0x1bb   :  { %v201_v36 = vsel %vm200_vm3, %v197_v32, -inf }
 0x1bd   :  { %v191_v33 = vpop.xlane.xlu0 %190 }
 0x1be   :  { %v198_v35 = vsel %vm195_vm2, %v191_v33, -1e+20 }
 0x1bf   :  { %v202_v37 = vsel %vm200_vm3, %v198_v35, -inf }
 0x1c0   :  { %v204_v38 = vmax.f32 %v201_v36, %v202_v37 }
 0x1c2   :  { %v205_v40 = vmax.f32 %v204_v38, %v203_v39 }
 0x1c4   :  { %v206_v41 = vsub.f32 %v197_v32, %v205_v40  ;;  %v207_v42 = vsub.f32 %v198_v35, %v205_v40  ;;  %v208_v43 = vsub.f32 %v199_v34, %v205_v40 }
 0x1c6   :  { %v209_v44 = vmul.f32 1.442695, %v206_v41  ;;  %v211_v45 = vmul.f32 1.442695, %v207_v42  ;;  %v213_v46 = vmul.f32 1.442695, %v208_v43 }
 0x1c8   :  { %328 = vpow2.f32 %v209_v44 }
 0x1c9   :  { %330 = vpow2.f32 %v211_v45 }
 0x1ca   :  { %332 = vpow2.f32 %v213_v46 }
 0x1d2   :  { %v329_v47 = vpop.eup %328 }
 0x1d3   :  { %v331_v48 = vpop.eup %330  ;;  %v215_v49 = vsel %vm200_vm3, %v329_v47, 0.0  ;;  %223 = vperm.xlu1 %312, %v329_v47  }
 0x1d4   :  { %v333_v50 = vpop.eup %332  ;;  %v216_v51 = vsel %vm200_vm3, %v331_v48, 0.0  ;;  %228 = vperm.xlu0 %313, %v331_v48  }
 0x1d5   :  { %v217_v52 = vadd.f32 %v216_v51, %v215_v49  ;;  %v218_v53 = vsel %vm200_vm3, %v333_v50, 0.0 }
 0x1d7   :  { %v219_v54 = vadd.f32 %v218_v53, %v217_v52  ;;  %233 = vperm.xlu1 %312, %v333_v50  }
 0x1d9   :  { %334 = vrcp.f32 %v219_v54 }
 0x1e3   :  { %v335_v55 = vpop.eup %334 }
 0x1e4   :  { %243 = vperm.xlu1 %312, %v335_v55  }
 0x252   :  { %v224_v56 = vpop.permute.xlu1 %223 }
 0x253   :  { %v229_v57 = vpop.permute.xlu0 %228  ;;  %v236_v60 = vmul.f32 %v224_v56, %v470_v4 }
 0x254   :  { %v237_v59 = vmul.f32 %v229_v57, %v472_v5 }
 0x256   :  { %v234_v58 = vpop.permute.xlu1 %233  ;;  %v239_v62 = vadd.f32 %v237_v59, %v236_v60 }
 0x257   :  { %v238_v61 = vmul.f32 %v234_v58, %v476_v11 }
 0x259   :  { %v240_v63 = vadd.f32 %v239_v62, %v238_v61 }
 0x263   :  { %v244_v0 = vpop.permute.xlu1 %243 }
 0x264   :  { %v246_v1 = vmul.f32 %v244_v0, %v240_v63 }
 0x266   :  { %247 = vst [vmem:[#allocation7] sm:$0xff] %v246_v1 }
 0x267   :  { %391 = shalt.err (!%p388_p6)
}
 0x268   :  { %s392_s27 = scalar_lea.hbm %s515_s5, 128 }
 0x269   :  { %p393_p7 = scmp.ne.s32.totalorder %s515_s5, %s392_s27  ;;  %p396_p8 = scmp.lt.u32.totalorder %s392_s27, %s515_s5 }
 0x26b   :  { %p398_p9 = pnand %p396_p8, %p393_p7 }
 0x26d   :  { %401 = shalt.err (!%p398_p9)
}
 0x26e   :  { %257 = dma.vmem_to_hbm [thread:$0]  %s255_s4, 128, %s515_s5, [#allocation4]  }
 0x26f   :  { %406 = dma.done.wait [#allocation4], 128  }
 0x270   :  { %407 = vsyncadd [#allocation4], 4294967168 }
 0x271   :  { %261 = vsyncpa [#allocation3], 1 }
 0x272   :  { %262 = vsyncpa [#allocation6], 1 }
 0x273   :  { %263 = vsyncpa [#allocation4], 1 }

// kernel: tpu_custom_call.1
= control target key start
LH: loop header
LB: loop body
LE: loop exit
PB: predicated region body
PF: predicated region fallthrough
CT: control target
= control target key end

     0   :  { %10 = vsyncpa [#allocation3], 0  ;;  %s510_s0 = inlined_call_operand.hbm [shape: f32[3,8,128], index: 0, kind: input, shape index: {}]   ;;  %s511_s1 = inlined_call_operand.vmem [shape: s32[8,1], index: 1, kind: input, shape index: {}]   ;;  %s512_s2 = inlined_call_operand.hbm [shape: bf16[128,128], index: 2, kind: input, shape index: {}]   ;;  %s513_s3 = inlined_call_operand.vmem [shape: f32[1,128], index: 3, kind: input, shape index: {}]   ;;  %s514_s4 = inlined_call_operand.vmem [shape: f32[1,128], index: 4, kind: input, shape index: {}]   ;;  %s515_s5 = inlined_call_operand.hbm [shape: f32[8,128], index: 5, kind: output, shape index: {}]  }
   0x1   :  { %11 = vsyncpa [#allocation6], 0 }
   0x2   :  { %12 = vsyncpa [#allocation4], 0  ;;  %s408_s18 = smov [#allocation2]   ;;  %s336_s22 = scalar_lea.hbm %s510_s0, 384 }
   0x3   :  { %s18_s19 = sshll.u32 %s408_s18, 4  ;;  %p337_p0 = scmp.ne.s32.totalorder %s510_s0, %s336_s22  ;;  %s19_s19 = int_to_ptr.vmem [resolvable:$true] %s18_s19 }
   0x4   :  { %p340_p1 = scmp.lt.u32.totalorder %s336_s22, %s510_s0 }
   0x6   :  { %p342_p2 = pnand %p340_p1, %p337_p0 }
   0x8   :  { %345 = shalt.err (!%p342_p2)
}
   0x9   :  { %s346_s27 = scalar_lea.vmem %s19_s19, 384  ;;  %p351_p4 = scmp.lt.s32.totalorder %s19_s19, %s19_s19 }
   0xa   :  { %p347_p3 = scmp.ne.s32.totalorder %s19_s19, %s346_s27  ;;  %p352_p5 = scmp.lt.s32.totalorder %s346_s27, %s346_s27 }
   0xc   :  { %p353_p6 = por %p352_p5, %p351_p4 }
   0xe   :  { %p354_p7 = pnand %p353_p6, %p347_p3 }
  0x10   :  { %357 = shalt.err (!%p354_p7)
}
  0x11   :  { %s409_s28 = smov 128   ;;  %s410_s29 = smov 8  }
  0x12   :  { %24 = dma.hbm_to_vmem [thread:$0]  %s510_s0, 384, %s19_s19, [#allocation3], %s409_s28, %s409_s28, %s410_s29  }
  0x13   :  { %s411_s7 = smov [#allocation5]   ;;  %s358_s11 = scalar_lea.hbm %s512_s2, 1024 }
  0x14   :  { %s32_s8 = sshll.u32 %s411_s7, 4  ;;  %p359_p8 = scmp.ne.s32.totalorder %s512_s2, %s358_s11  ;;  %s33_s8 = int_to_ptr.vmem [resolvable:$true] %s32_s8 }
  0x15   :  { %p362_p9 = scmp.lt.u32.totalorder %s358_s11, %s512_s2 }
  0x17   :  { %p364_p10 = pnand %p362_p9, %p359_p8 }
  0x19   :  { %367 = shalt.err (!%p364_p10)
}
  0x1a   :  { %s368_s16 = scalar_lea.vmem %s33_s8, 1024  ;;  %p373_p12 = scmp.lt.s32.totalorder %s33_s8, %s33_s8 }
  0x1b   :  { %p369_p11 = scmp.ne.s32.totalorder %s33_s8, %s368_s16  ;;  %p374_p13 = scmp.lt.s32.totalorder %s368_s16, %s368_s16 }
  0x1d   :  { %p375_p0 = por %p374_p13, %p373_p12 }
  0x1f   :  { %p376_p1 = pnand %p375_p0, %p369_p11 }
  0x21   :  { %379 = shalt.err (!%p376_p1)
}
  0x22   :  { %s412_s0 = smov 64   ;;  %s413_s17 = smov 4  }
  0x23   :  { %38 = dma.hbm_to_vmem [thread:$0]  %s512_s2, 1024, %s33_s8, [#allocation6], %s412_s0, %s412_s0, %s413_s17  }
  0x24   :  { %402 = dma.done.wait [#allocation3], 384  }
  0x25   :  { %403 = vsyncadd [#allocation3], 4294966912 }
  0x26   :  { %404 = dma.done.wait [#allocation6], 1024  }
  0x27   :  { %405 = vsyncadd [#allocation6], 4294966272  ;;  %v314_v0 = vld [vmem:[#allocation5] sm:$0xff]   ;;  %v315_v1 = vld [vmem:[#allocation5 + $0x8] sm:$0xff]   ;;  %v414_v28 = vmov 0   ;;  %vm200_vm3 = vcmask 7168  }
  0x28   :  { %284 = vmatprep.subr.bf16.mxu0 %v314_v0  ;;  %v316_v2 = vld [vmem:[#allocation5 + $0x10] sm:$0xff]   ;;  %v317_v3 = vld [vmem:[#allocation5 + $0x18] sm:$0xff]   ;;  %v470_v4 = vld [vmem:[#allocation2] sm:$0xff]  ;;  %313 = vset.pattern.permute.xlu0 %v414_v28 }
  0x29   :  { %285 = vmatpush3.bf16.msra.mxu0 %v314_v0  ;;  %v472_v5 = vld [vmem:[#allocation2 + $0x8] sm:$0xff]  ;;  %v318_v7 = vld [vmem:[#allocation5 + $0x20] sm:$0xff]   ;;  %v319_v8 = vld [vmem:[#allocation5 + $0x28] sm:$0xff]   ;;  %312 = vset.pattern.permute.xlu1 %v414_v28 }
  0x2a   :  { %286 = vmatprep.subr.bf16.mxu0 %v315_v1  ;;  %v72_v6 = vpack.c.bf16 %v472_v5, %v470_v4  ;;  %v320_v9 = vld [vmem:[#allocation5 + $0x30] sm:$0xff]   ;;  %v321_v10 = vld [vmem:[#allocation5 + $0x38] sm:$0xff]   ;;  %v264_v13 = vld [vmem:[%s513_s3] ss:$0 sm:$0xff] }
  0x2b   :  { %v476_v11 = vld [vmem:[#allocation2 + $0x10] sm:$0xff]  ;;  %v273_v21 = vld [vmem:[%s514_s4] ss:$0 sm:$0xff] }
  0x2c   :  { %300 = vmatprep.mubr.bf16.mxu0 %v72_v6  ;;  %v73_v12 = vpack.c.bf16 %v476_v11, %v476_v11  ;;  %v68_v29 = vld [vmem:[%s511_s1] sm:$0xff]  ;;  %s415_s1 = smov [#allocation7]  }
  0x2d   :  { %287 = vmatpush3.bf16.msra.mxu0 %v315_v1  ;;  %vm194_vm0 = vcmp.gt.s32.totalorder %v68_v29, 0  ;;  %vm196_vm1 = vcmp.gt.s32.totalorder %v68_v29, 2  ;;  %vm195_vm2 = vcmp.gt.s32.totalorder %v68_v29, 1  ;;  %s254_s4 = sshll.u32 %s415_s1, 4  ;;  %s255_s4 = int_to_ptr.vmem [resolvable:$true] %s254_s4 }
  0x2e   :  { %288 = vmatprep.subr.bf16.mxu0 %v316_v2  ;;  %s380_s24 = scalar_lea.vmem %s255_s4, 128  ;;  %p385_p3 = scmp.lt.s32.totalorder %s255_s4, %s255_s4 }
  0x2f   :  { %p381_p2 = scmp.ne.s32.totalorder %s255_s4, %s380_s24  ;;  %p386_p4 = scmp.lt.s32.totalorder %s380_s24, %s380_s24 }
  0x31   :  { %289 = vmatpush3.bf16.msra.mxu0 %v316_v2  ;;  %p387_p5 = por %p386_p4, %p385_p3 }
  0x32   :  { %290 = vmatprep.subr.bf16.mxu0 %v317_v3 }
  0x33   :  { %p388_p6 = pnand %p387_p5, %p381_p2 }
  0x35   :  { %291 = vmatpush3.bf16.msra.mxu0 %v317_v3 }
  0x36   :  { %292 = vmatprep.subr.bf16.mxu0 %v318_v7 }
  0x39   :  { %293 = vmatpush3.bf16.msra.mxu0 %v318_v7 }
  0x3a   :  { %294 = vmatprep.subr.bf16.mxu0 %v319_v8 }
  0x3d   :  { %295 = vmatpush3.bf16.msra.mxu0 %v319_v8 }
  0x3e   :  { %296 = vmatprep.subr.bf16.mxu0 %v320_v9 }
  0x41   :  { %297 = vmatpush3.bf16.msra.mxu0 %v320_v9 }
  0x42   :  { %298 = vmatprep.subr.bf16.mxu0 %v321_v10 }
  0x45   :  { %299 = vmatpush3.bf16.msra.mxu0 %v321_v10 }
  0x48   :  { %301 = vmatmul.mubr.bf16.vlgmr.msra.gmra.mrb[0].mxu0 %v73_v12 }
 0x11b   :  { %v302_v14 = vpop.f32.mrb[0].mxu0 }
 0x11c   :  { %v171_v15 = vadd.f32 %v302_v14, %v264_v13  ;;  %v162_v16 = vpop.f32.mrb[1].mxu0 }
 0x11d   :  { %v163_v17 = vadd.f32 %v264_v13, %v162_v16  ;;  %v303_v18 = vpop.f32.mrb[2].mxu0 }
 0x11e   :  { %322 = vtanh.f32 %v171_v15  ;;  %v165_v19 = vpop.f32.mrb[3].mxu0 }
 0x11f   :  { %324 = vtanh.f32 %v163_v17  ;;  %v166_v20 = vadd.f32 %v264_v13, %v165_v19 }
 0x121   :  { %326 = vtanh.f32 %v166_v20 }
 0x128   :  { %v323_v22 = vpop.eup %322 }
 0x129   :  { %v325_v23 = vpop.eup %324  ;;  %v187_v24 = vmul.f32 %v323_v22, %v273_v21 }
 0x12a   :  { %v185_v25 = vmul.f32 %v325_v23, %v273_v21 }
 0x12b   :  { %v327_v26 = vpop.eup %326  ;;  %192 = vadd.xlane.f32.xlu1 %v187_v24 }
 0x12c   :  { %188 = vadd.xlane.f32.xlu0 %v185_v25  ;;  %v186_v27 = vmul.f32 %v327_v26, %v273_v21 }
 0x130   :  { %190 = vadd.xlane.f32.xlu0 %v186_v27 }
 0x1b8   :  { %v193_v31 = vpop.xlane.xlu1 %192 }
 0x1b9   :  { %v189_v30 = vpop.xlane.xlu0 %188  ;;  %v199_v34 = vsel %vm196_vm1, %v193_v31, -1e+20 }
 0x1ba   :  { %v197_v32 = vsel %vm194_vm0, %v189_v30, -1e+20  ;;  %v203_v39 = vsel %vm200_vm3, %v199_v34, -inf }
 0x1bb   :  { %v201_v36 = vsel %vm200_vm3, %v197_v32, -inf }
 0x1bd   :  { %v191_v33 = vpop.xlane.xlu0 %190 }
 0x1be   :  { %v198_v35 = vsel %vm195_vm2, %v191_v33, -1e+20 }
 0x1bf   :  { %v202_v37 = vsel %vm200_vm3, %v198_v35, -inf }
 0x1c0   :  { %v204_v38 = vmax.f32 %v201_v36, %v202_v37 }
 0x1c2   :  { %v205_v40 = vmax.f32 %v204_v38, %v203_v39 }
 0x1c4   :  { %v206_v41 = vsub.f32 %v197_v32, %v205_v40  ;;  %v207_v42 = vsub.f32 %v198_v35, %v205_v40  ;;  %v208_v43 = vsub.f32 %v199_v34, %v205_v40 }
 0x1c6   :  { %v209_v44 = vmul.f32 1.442695, %v206_v41  ;;  %v211_v45 = vmul.f32 1.442695, %v207_v42  ;;  %v213_v46 = vmul.f32 1.442695, %v208_v43 }
 0x1c8   :  { %328 = vpow2.f32 %v209_v44 }
 0x1c9   :  { %330 = vpow2.f32 %v211_v45 }
 0x1ca   :  { %332 = vpow2.f32 %v213_v46 }
 0x1d2   :  { %v329_v47 = vpop.eup %328 }
 0x1d3   :  { %v331_v48 = vpop.eup %330  ;;  %v215_v49 = vsel %vm200_vm3, %v329_v47, 0.0  ;;  %223 = vperm.xlu1 %312, %v329_v47  }
 0x1d4   :  { %v333_v50 = vpop.eup %332  ;;  %v216_v51 = vsel %vm200_vm3, %v331_v48, 0.0  ;;  %228 = vperm.xlu0 %313, %v331_v48  }
 0x1d5   :  { %v217_v52 = vadd.f32 %v216_v51, %v215_v49  ;;  %v218_v53 = vsel %vm200_vm3, %v333_v50, 0.0 }
 0x1d7   :  { %v219_v54 = vadd.f32 %v218_v53, %v217_v52  ;;  %233 = vperm.xlu1 %312, %v333_v50  }
 0x1d9   :  { %334 = vrcp.f32 %v219_v54 }
 0x1e3   :  { %v335_v55 = vpop.eup %334 }
 0x1e4   :  { %243 = vperm.xlu1 %312, %v335_v55  }
 0x252   :  { %v224_v56 = vpop.permute.xlu1 %223 }
 0x253   :  { %v229_v57 = vpop.permute.xlu0 %228  ;;  %v236_v60 = vmul.f32 %v224_v56, %v470_v4 }
 0x254   :  { %v237_v59 = vmul.f32 %v229_v57, %v472_v5 }
 0x256   :  { %v234_v58 = vpop.permute.xlu1 %233  ;;  %v239_v62 = vadd.f32 %v237_v59, %v236_v60 }
 0x257   :  { %v238_v61 = vmul.f32 %v234_v58, %v476_v11 }
 0x259   :  { %v240_v63 = vadd.f32 %v239_v62, %v238_v61 }
 0x263   :  { %v244_v0 = vpop.permute.xlu1 %243 }
 0x264   :  { %v246_v1 = vmul.f32 %v244_v0, %v240_v63 }
 0x266   :  { %247 = vst [vmem:[#allocation7] sm:$0xff] %v246_v1 }
 0x267   :  { %391 = shalt.err (!%p388_p6)
}
 0x268   :  { %s392_s27 = scalar_lea.hbm %s515_s5, 128 }
 0x269   :  { %p393_p7 = scmp.ne.s32.totalorder %s515_s5, %s392_s27  ;;  %p396_p8 = scmp.lt.u32.totalorder %s392_s27, %s515_s5 }
 0x26b   :  { %p398_p9 = pnand %p396_p8, %p393_p7 }
 0x26d   :  { %401 = shalt.err (!%p398_p9)
}
 0x26e   :  { %257 = dma.vmem_to_hbm [thread:$0]  %s255_s4, 128, %s515_s5, [#allocation4]  }
 0x26f   :  { %406 = dma.done.wait [#allocation4], 128  }
 0x270   :  { %407 = vsyncadd [#allocation4], 4294967168 }
 0x271   :  { %261 = vsyncpa [#allocation3], 1 }
 0x272   :  { %262 = vsyncpa [#allocation6], 1 }
 0x273   :  { %263 = vsyncpa [#allocation4], 1 }

</bundles_post_ra>
